<compile_context>
chip_gen: v7x
topology: tpu7x:2x2x1
jax: 0.10.0
libtpu: 0.0.40
codegen_flags: <defaults>
</compile_context>

<pallas_src>
import functools
import numpy as np

import jax
import jax.numpy as jnp
from jax.experimental import pallas as pl
from jax.experimental.pallas import tpu as pltpu


def _occgrid_kernel(words_ref, pts_ref, out_ref, *, lo, hi, gmin, voxel,
                    basis, n_grid, n_words):
    # words_ref : (n_words,) int32 in SMEM  (bit-packed occupancy, LSB-first;
    #             bit n_grid and all padding bits are 0)
    # pts_ref   : (3, 8, T) f32 in VMEM     (x/y/z planes, points dense)
    # out_ref   : (8, T) int32 in VMEM      (0/1 occupancy)
    x = pts_ref[0]
    y = pts_ref[1]
    z = pts_ref[2]

    ix = jnp.floor((x - gmin[0]) / voxel[0]).astype(jnp.int32)
    iy = jnp.floor((y - gmin[1]) / voxel[1]).astype(jnp.int32)
    iz = jnp.floor((z - gmin[2]) / voxel[2]).astype(jnp.int32)
    flat = ix * basis[0] + iy * basis[1] + iz * basis[2]          # (8, T)

    invalid = ((x >= hi[0]) | (x < lo[0]) |
               (y >= hi[1]) | (y < lo[1]) |
               (z >= hi[2]) | (z < lo[2]))                        # (8, T)

    # torch writes index -1 (selects the appended False); here that is the
    # zero bit at linear index n_grid.
    flat = jnp.where(invalid, jnp.int32(n_grid), flat)            # (8, T)

    widx = flat >> 5                                              # word index
    bidx = flat & 31                                              # bit index

    # Gather the packed word per point: scalar SMEM read + splat + select.
    word = jnp.zeros_like(flat)
    if n_words <= 64:
        for wi in range(n_words):                                 # unrolled
            word = jnp.where(widx == wi, words_ref[wi], word)
    else:
        def body(wi, acc):
            return jnp.where(widx == wi, words_ref[wi], acc)
        word = jax.lax.fori_loop(0, n_words, body, word)

    out_ref[...] = jnp.right_shift(word, bidx) & 1                # (8, T) int32


class OccupancyGridPallas:
    """Pallas/TPU implementation of OccupancyGrid.forward."""

    def __init__(self, grid_map, global_min_pt, global_max_pt, res):
        global_min_pt = np.asarray(global_min_pt)
        global_max_pt = np.asarray(global_max_pt)
        res = np.asarray(res)
        assert global_min_pt.shape == global_max_pt.shape == res.shape == (3,)
        assert tuple(grid_map.shape) == tuple(int(r) for r in res)

        gmin32 = np.asarray(global_min_pt, np.float32)
        gmax32 = np.asarray(global_max_pt, np.float32)
        res32 = np.asarray(res, np.float32)
        voxel32 = (gmax32 - gmin32) / res32                    # float32, as torch
        eps32 = np.float32(1e-5)

        self.gmin = tuple(float(v) for v in gmin32)
        self.voxel = tuple(float(v) for v in voxel32)
        self.hi = tuple(float(v) for v in (gmax32 - eps32))    # f32 thresholds
        self.lo = tuple(float(v) for v in (gmin32 + eps32))

        r0, r1, r2 = (int(v) for v in res)
        self.basis = (r2 * r1, r2, 1)
        self.n_grid = r0 * r1 * r2

        # Bit-pack the occupancy map, LSB-first, 32 voxels per int32 word.
        # Bit at index n_grid (torch's appended False) and padding bits stay 0.
        n_bits = self.n_grid + 1
        self.n_words = (n_bits + 31) // 32
        bits = np.zeros(self.n_words * 32, np.uint64)
        bits[: self.n_grid] = np.asarray(grid_map, bool).reshape(-1)
        weights = np.uint64(1) << np.arange(32, dtype=np.uint64)
        packed64 = (bits.reshape(self.n_words, 32) * weights).sum(axis=1)
        packed_u32 = packed64.astype(np.uint32)                # values < 2**32
        self.grid_words = jnp.asarray(packed_u32.view(np.int32))  # (n_words,)

    def __call__(self, pts, lane_tile=512):
        pts = jnp.asarray(pts, jnp.float32)
        assert pts.shape[-1] == 3
        lead_shape = pts.shape[:-1]
        n = int(np.prod(lead_shape)) if lead_shape else 1
        pts2 = pts.reshape(n, 3)

        block_pts = 8 * lane_tile                              # points per step
        npad = ((n + block_pts - 1) // block_pts) * block_pts
        rows = npad // lane_tile                               # multiple of 8

        # Single transpose + pad, then a dense (3, rows, lane_tile) layout so
        # each grid step sees sublane+lane dense slabs.
        pts_t = jnp.pad(pts2.T, ((0, 0), (0, npad - n)))
        pts_t = pts_t.reshape(3, rows, lane_tile)

        kernel = functools.partial(
            _occgrid_kernel, lo=self.lo, hi=self.hi, gmin=self.gmin,
            voxel=self.voxel, basis=self.basis, n_grid=self.n_grid,
            n_words=self.n_words)

        out = pl.pallas_call(
            kernel,
            out_shape=jax.ShapeDtypeStruct((rows, lane_tile), jnp.int32),
            grid_spec=pltpu.PrefetchScalarGridSpec(
                num_scalar_prefetch=1,
                grid=(rows // 8,),
                in_specs=[
                    pl.BlockSpec((3, 8, lane_tile), lambda i, w: (0, i, 0)),
                ],
                out_specs=pl.BlockSpec((8, lane_tile), lambda i, w: (i, 0)),
            ),
            compiler_params=pltpu.CompilerParams(
                dimension_semantics=("parallel",)),
        )(self.grid_words, pts_t)

        out = out.reshape(npad)[:n].astype(jnp.bool_)
        return out.reshape(lead_shape)


def _numpy_reference(pts, grid_map, gmin, gmax, res):
    """Straight NumPy port of the torch forward (float32 math, like torch)."""
    pts = np.asarray(pts, np.float32)
    gmin = np.asarray(gmin, np.float32)
    gmax = np.asarray(gmax, np.float32)
    res32 = np.asarray(res, np.float32)
    eps = np.float32(1e-5)
    voxel = (gmax - gmin) / res32

    invalid = np.any(
        np.concatenate([pts >= (gmax - eps), pts < (gmin + eps)], axis=-1),
        axis=-1)
    idx = np.floor((pts - gmin) / voxel).astype(np.int64)
    basis = np.array([res[2] * res[1], res[2], 1], dtype=np.int64)
    flat = (idx * basis).sum(-1)
    flat[invalid] = -1
    grid_flat = np.append(np.asarray(grid_map, bool).reshape(-1), False)
    return grid_flat[flat]


if __name__ == "__main__":
    key = jax.random.PRNGKey(0)
    k_map, k_pts = jax.random.split(key)

    # Module parameters / state (deterministic, in-script).
    res = np.array([8, 8, 8], dtype=np.int64)
    global_min_pt = np.array([-1.0, -2.0, 0.5], dtype=np.float32)
    global_max_pt = np.array([3.0, 2.0, 4.5], dtype=np.float32)
    grid_map = np.asarray(
        jax.random.bernoulli(k_map, 0.5, tuple(int(r) for r in res)))

    # Query points (some deliberately outside the grid -> invalid path).
    n_pts = 200
    span = global_max_pt - global_min_pt
    pts = jax.random.uniform(
        k_pts, (n_pts, 3), jnp.float32,
        minval=jnp.asarray(global_min_pt - 0.5 * span),
        maxval=jnp.asarray(global_max_pt + 0.5 * span))

    occ = OccupancyGridPallas(grid_map, global_min_pt, global_max_pt, res)
    out = occ(pts)
    out = jax.block_until_ready(out)

    ref = _numpy_reference(np.asarray(pts), grid_map,
                           global_min_pt, global_max_pt, res)
    assert out.shape == ref.shape and out.dtype == jnp.bool_
    assert np.array_equal(np.asarray(out), ref), "mismatch vs torch-equivalent reference"

    print("KERNEL_OK")
</pallas_src>

<mosaic_0001>
module attributes {stable_mosaic.version = 11 : i64} {
  func.func @_occgrid_kernel(%arg0: i32, %arg1: memref<17xi32, #tpu.memory_space<smem>>, %arg2: memref<3x8x512xf32, #tpu.memory_space<vmem>>, %arg3: memref<8x512xi32, #tpu.memory_space<vmem>>) attributes {dimension_semantics = [#tpu.dimension_semantics<parallel>], iteration_bounds = array<i64: 1>, scalar_prefetch = 1 : i64, scratch_operands = 0 : i64, tpu.core_type = #tpu.core_type<tc>, window_params = [{transform_indices = @transform_0, window_bounds = array<i64: 3, 8, 512>}, {transform_indices = @transform_1, window_bounds = array<i64: 8, 512>}]} {
    %c0 = arith.constant 0 : index
    %c0_0 = arith.constant 0 : index
    %c0_1 = arith.constant 0 : index
    %0 = vector.load %arg2[%c0, %c0_0, %c0_1] : memref<3x8x512xf32, #tpu.memory_space<vmem>>, vector<1x8x512xf32>
    %1 = vector.shape_cast %0 : vector<1x8x512xf32> to vector<8x512xf32>
    %c1 = arith.constant 1 : index
    %c0_2 = arith.constant 0 : index
    %c0_3 = arith.constant 0 : index
    %2 = vector.load %arg2[%c1, %c0_2, %c0_3] : memref<3x8x512xf32, #tpu.memory_space<vmem>>, vector<1x8x512xf32>
    %3 = vector.shape_cast %2 : vector<1x8x512xf32> to vector<8x512xf32>
    %c2 = arith.constant 2 : index
    %c0_4 = arith.constant 0 : index
    %c0_5 = arith.constant 0 : index
    %4 = vector.load %arg2[%c2, %c0_4, %c0_5] : memref<3x8x512xf32, #tpu.memory_space<vmem>>, vector<1x8x512xf32>
    %5 = vector.shape_cast %4 : vector<1x8x512xf32> to vector<8x512xf32>
    %cst = arith.constant -1.000000e+00 : f32
    %6 = vector.broadcast %cst : f32 to vector<8x512xf32>
    %7 = arith.subf %1, %6 : vector<8x512xf32>
    %cst_6 = arith.constant 5.000000e-01 : f32
    %8 = vector.broadcast %cst_6 : f32 to vector<8x512xf32>
    %9 = arith.divf %7, %8 : vector<8x512xf32>
    %10 = math.floor %9 : vector<8x512xf32>
    %11 = arith.fptosi %10 : vector<8x512xf32> to vector<8x512xi32>
    %cst_7 = arith.constant -2.000000e+00 : f32
    %12 = vector.broadcast %cst_7 : f32 to vector<8x512xf32>
    %13 = arith.subf %3, %12 : vector<8x512xf32>
    %cst_8 = arith.constant 5.000000e-01 : f32
    %14 = vector.broadcast %cst_8 : f32 to vector<8x512xf32>
    %15 = arith.divf %13, %14 : vector<8x512xf32>
    %16 = math.floor %15 : vector<8x512xf32>
    %17 = arith.fptosi %16 : vector<8x512xf32> to vector<8x512xi32>
    %cst_9 = arith.constant 5.000000e-01 : f32
    %18 = vector.broadcast %cst_9 : f32 to vector<8x512xf32>
    %19 = arith.subf %5, %18 : vector<8x512xf32>
    %cst_10 = arith.constant 5.000000e-01 : f32
    %20 = vector.broadcast %cst_10 : f32 to vector<8x512xf32>
    %21 = arith.divf %19, %20 : vector<8x512xf32>
    %22 = math.floor %21 : vector<8x512xf32>
    %23 = arith.fptosi %22 : vector<8x512xf32> to vector<8x512xi32>
    %c64_i32 = arith.constant 64 : i32
    %24 = vector.broadcast %c64_i32 : i32 to vector<8x512xi32>
    %25 = arith.muli %11, %24 : vector<8x512xi32>
    %c8_i32 = arith.constant 8 : i32
    %26 = vector.broadcast %c8_i32 : i32 to vector<8x512xi32>
    %27 = arith.muli %17, %26 : vector<8x512xi32>
    %28 = arith.addi %25, %27 : vector<8x512xi32>
    %c1_i32 = arith.constant 1 : i32
    %29 = vector.broadcast %c1_i32 : i32 to vector<8x512xi32>
    %30 = arith.muli %23, %29 : vector<8x512xi32>
    %31 = arith.addi %28, %30 : vector<8x512xi32>
    %cst_11 = arith.constant 2.999990e+00 : f32
    %32 = vector.broadcast %cst_11 : f32 to vector<8x512xf32>
    %33 = arith.cmpf oge, %1, %32 : vector<8x512xf32>
    %cst_12 = arith.constant -0.999989986 : f32
    %34 = vector.broadcast %cst_12 : f32 to vector<8x512xf32>
    %35 = arith.cmpf olt, %1, %34 : vector<8x512xf32>
    %36 = arith.ori %33, %35 : vector<8x512xi1>
    %cst_13 = arith.constant 1.999990e+00 : f32
    %37 = vector.broadcast %cst_13 : f32 to vector<8x512xf32>
    %38 = arith.cmpf oge, %3, %37 : vector<8x512xf32>
    %39 = arith.ori %36, %38 : vector<8x512xi1>
    %cst_14 = arith.constant -1.999990e+00 : f32
    %40 = vector.broadcast %cst_14 : f32 to vector<8x512xf32>
    %41 = arith.cmpf olt, %3, %40 : vector<8x512xf32>
    %42 = arith.ori %39, %41 : vector<8x512xi1>
    %cst_15 = arith.constant 4.499990e+00 : f32
    %43 = vector.broadcast %cst_15 : f32 to vector<8x512xf32>
    %44 = arith.cmpf oge, %5, %43 : vector<8x512xf32>
    %45 = arith.ori %42, %44 : vector<8x512xi1>
    %cst_16 = arith.constant 5.000100e-01 : f32
    %46 = vector.broadcast %cst_16 : f32 to vector<8x512xf32>
    %47 = arith.cmpf olt, %5, %46 : vector<8x512xf32>
    %48 = arith.ori %45, %47 : vector<8x512xi1>
    %c512_i32 = arith.constant 512 : i32
    %49 = vector.broadcast %c512_i32 : i32 to vector<8x512xi32>
    %50 = arith.select %48, %49, %31 : vector<8x512xi1>, vector<8x512xi32>
    %c5_i32 = arith.constant 5 : i32
    %51 = vector.broadcast %c5_i32 : i32 to vector<8x512xi32>
    %52 = arith.shrsi %50, %51 : vector<8x512xi32>
    %c31_i32 = arith.constant 31 : i32
    %53 = vector.broadcast %c31_i32 : i32 to vector<8x512xi32>
    %54 = arith.andi %50, %53 : vector<8x512xi32>
    %c0_i32 = arith.constant 0 : i32
    %55 = vector.broadcast %c0_i32 : i32 to vector<8x512xi32>
    %c0_i32_17 = arith.constant 0 : i32
    %56 = vector.broadcast %c0_i32_17 : i32 to vector<8x512xi32>
    %57 = arith.cmpi eq, %52, %56 : vector<8x512xi32>
    %c0_18 = arith.constant 0 : index
    %58 = memref.load %arg1[%c0_18] : memref<17xi32, #tpu.memory_space<smem>>
    %59 = vector.broadcast %58 : i32 to vector<8x512xi32>
    %60 = arith.select %57, %59, %55 : vector<8x512xi1>, vector<8x512xi32>
    %c1_i32_19 = arith.constant 1 : i32
    %61 = vector.broadcast %c1_i32_19 : i32 to vector<8x512xi32>
    %62 = arith.cmpi eq, %52, %61 : vector<8x512xi32>
    %c1_20 = arith.constant 1 : index
    %63 = memref.load %arg1[%c1_20] : memref<17xi32, #tpu.memory_space<smem>>
    %64 = vector.broadcast %63 : i32 to vector<8x512xi32>
    %65 = arith.select %62, %64, %60 : vector<8x512xi1>, vector<8x512xi32>
    %c2_i32 = arith.constant 2 : i32
    %66 = vector.broadcast %c2_i32 : i32 to vector<8x512xi32>
    %67 = arith.cmpi eq, %52, %66 : vector<8x512xi32>
    %c2_21 = arith.constant 2 : index
    %68 = memref.load %arg1[%c2_21] : memref<17xi32, #tpu.memory_space<smem>>
    %69 = vector.broadcast %68 : i32 to vector<8x512xi32>
    %70 = arith.select %67, %69, %65 : vector<8x512xi1>, vector<8x512xi32>
    %c3_i32 = arith.constant 3 : i32
    %71 = vector.broadcast %c3_i32 : i32 to vector<8x512xi32>
    %72 = arith.cmpi eq, %52, %71 : vector<8x512xi32>
    %c3 = arith.constant 3 : index
    %73 = memref.load %arg1[%c3] : memref<17xi32, #tpu.memory_space<smem>>
    %74 = vector.broadcast %73 : i32 to vector<8x512xi32>
    %75 = arith.select %72, %74, %70 : vector<8x512xi1>, vector<8x512xi32>
    %c4_i32 = arith.constant 4 : i32
    %76 = vector.broadcast %c4_i32 : i32 to vector<8x512xi32>
    %77 = arith.cmpi eq, %52, %76 : vector<8x512xi32>
    %c4 = arith.constant 4 : index
    %78 = memref.load %arg1[%c4] : memref<17xi32, #tpu.memory_space<smem>>
    %79 = vector.broadcast %78 : i32 to vector<8x512xi32>
    %80 = arith.select %77, %79, %75 : vector<8x512xi1>, vector<8x512xi32>
    %c5_i32_22 = arith.constant 5 : i32
    %81 = vector.broadcast %c5_i32_22 : i32 to vector<8x512xi32>
    %82 = arith.cmpi eq, %52, %81 : vector<8x512xi32>
    %c5 = arith.constant 5 : index
    %83 = memref.load %arg1[%c5] : memref<17xi32, #tpu.memory_space<smem>>
    %84 = vector.broadcast %83 : i32 to vector<8x512xi32>
    %85 = arith.select %82, %84, %80 : vector<8x512xi1>, vector<8x512xi32>
    %c6_i32 = arith.constant 6 : i32
    %86 = vector.broadcast %c6_i32 : i32 to vector<8x512xi32>
    %87 = arith.cmpi eq, %52, %86 : vector<8x512xi32>
    %c6 = arith.constant 6 : index
    %88 = memref.load %arg1[%c6] : memref<17xi32, #tpu.memory_space<smem>>
    %89 = vector.broadcast %88 : i32 to vector<8x512xi32>
    %90 = arith.select %87, %89, %85 : vector<8x512xi1>, vector<8x512xi32>
    %c7_i32 = arith.constant 7 : i32
    %91 = vector.broadcast %c7_i32 : i32 to vector<8x512xi32>
    %92 = arith.cmpi eq, %52, %91 : vector<8x512xi32>
    %c7 = arith.constant 7 : index
    %93 = memref.load %arg1[%c7] : memref<17xi32, #tpu.memory_space<smem>>
    %94 = vector.broadcast %93 : i32 to vector<8x512xi32>
    %95 = arith.select %92, %94, %90 : vector<8x512xi1>, vector<8x512xi32>
    %c8_i32_23 = arith.constant 8 : i32
    %96 = vector.broadcast %c8_i32_23 : i32 to vector<8x512xi32>
    %97 = arith.cmpi eq, %52, %96 : vector<8x512xi32>
    %c8 = arith.constant 8 : index
    %98 = memref.load %arg1[%c8] : memref<17xi32, #tpu.memory_space<smem>>
    %99 = vector.broadcast %98 : i32 to vector<8x512xi32>
    %100 = arith.select %97, %99, %95 : vector<8x512xi1>, vector<8x512xi32>
    %c9_i32 = arith.constant 9 : i32
    %101 = vector.broadcast %c9_i32 : i32 to vector<8x512xi32>
    %102 = arith.cmpi eq, %52, %101 : vector<8x512xi32>
    %c9 = arith.constant 9 : index
    %103 = memref.load %arg1[%c9] : memref<17xi32, #tpu.memory_space<smem>>
    %104 = vector.broadcast %103 : i32 to vector<8x512xi32>
    %105 = arith.select %102, %104, %100 : vector<8x512xi1>, vector<8x512xi32>
    %c10_i32 = arith.constant 10 : i32
    %106 = vector.broadcast %c10_i32 : i32 to vector<8x512xi32>
    %107 = arith.cmpi eq, %52, %106 : vector<8x512xi32>
    %c10 = arith.constant 10 : index
    %108 = memref.load %arg1[%c10] : memref<17xi32, #tpu.memory_space<smem>>
    %109 = vector.broadcast %108 : i32 to vector<8x512xi32>
    %110 = arith.select %107, %109, %105 : vector<8x512xi1>, vector<8x512xi32>
    %c11_i32 = arith.constant 11 : i32
    %111 = vector.broadcast %c11_i32 : i32 to vector<8x512xi32>
    %112 = arith.cmpi eq, %52, %111 : vector<8x512xi32>
    %c11 = arith.constant 11 : index
    %113 = memref.load %arg1[%c11] : memref<17xi32, #tpu.memory_space<smem>>
    %114 = vector.broadcast %113 : i32 to vector<8x512xi32>
    %115 = arith.select %112, %114, %110 : vector<8x512xi1>, vector<8x512xi32>
    %c12_i32 = arith.constant 12 : i32
    %116 = vector.broadcast %c12_i32 : i32 to vector<8x512xi32>
    %117 = arith.cmpi eq, %52, %116 : vector<8x512xi32>
    %c12 = arith.constant 12 : index
    %118 = memref.load %arg1[%c12] : memref<17xi32, #tpu.memory_space<smem>>
    %119 = vector.broadcast %118 : i32 to vector<8x512xi32>
    %120 = arith.select %117, %119, %115 : vector<8x512xi1>, vector<8x512xi32>
    %c13_i32 = arith.constant 13 : i32
    %121 = vector.broadcast %c13_i32 : i32 to vector<8x512xi32>
    %122 = arith.cmpi eq, %52, %121 : vector<8x512xi32>
    %c13 = arith.constant 13 : index
    %123 = memref.load %arg1[%c13] : memref<17xi32, #tpu.memory_space<smem>>
    %124 = vector.broadcast %123 : i32 to vector<8x512xi32>
    %125 = arith.select %122, %124, %120 : vector<8x512xi1>, vector<8x512xi32>
    %c14_i32 = arith.constant 14 : i32
    %126 = vector.broadcast %c14_i32 : i32 to vector<8x512xi32>
    %127 = arith.cmpi eq, %52, %126 : vector<8x512xi32>
    %c14 = arith.constant 14 : index
    %128 = memref.load %arg1[%c14] : memref<17xi32, #tpu.memory_space<smem>>
    %129 = vector.broadcast %128 : i32 to vector<8x512xi32>
    %130 = arith.select %127, %129, %125 : vector<8x512xi1>, vector<8x512xi32>
    %c15_i32 = arith.constant 15 : i32
    %131 = vector.broadcast %c15_i32 : i32 to vector<8x512xi32>
    %132 = arith.cmpi eq, %52, %131 : vector<8x512xi32>
    %c15 = arith.constant 15 : index
    %133 = memref.load %arg1[%c15] : memref<17xi32, #tpu.memory_space<smem>>
    %134 = vector.broadcast %133 : i32 to vector<8x512xi32>
    %135 = arith.select %132, %134, %130 : vector<8x512xi1>, vector<8x512xi32>
    %c16_i32 = arith.constant 16 : i32
    %136 = vector.broadcast %c16_i32 : i32 to vector<8x512xi32>
    %137 = arith.cmpi eq, %52, %136 : vector<8x512xi32>
    %c16 = arith.constant 16 : index
    %138 = memref.load %arg1[%c16] : memref<17xi32, #tpu.memory_space<smem>>
    %139 = vector.broadcast %138 : i32 to vector<8x512xi32>
    %140 = arith.select %137, %139, %135 : vector<8x512xi1>, vector<8x512xi32>
    %141 = arith.shrsi %140, %54 : vector<8x512xi32>
    %c1_i32_24 = arith.constant 1 : i32
    %142 = vector.broadcast %c1_i32_24 : i32 to vector<8x512xi32>
    %143 = arith.andi %141, %142 : vector<8x512xi32>
    %c0_25 = arith.constant 0 : index
    %c0_26 = arith.constant 0 : index
    %144 = vector.load %arg3[%c0_25, %c0_26] : memref<8x512xi32, #tpu.memory_space<vmem>>, vector<8x512xi32>
    tpu.vector_store %arg3[%c0_25, %c0_26], %143 {strides = array<i32>} : memref<8x512xi32, #tpu.memory_space<vmem>>, vector<8x512xi32>,
    return
  }
  func.func @transform_0(%arg0: i32, %arg1: memref<17xi32, #tpu.memory_space<smem>>) -> (i32, i32, i32) {
    %c0_i32 = arith.constant 0 : i32
    %c0_i32_0 = arith.constant 0 : i32
    %c0_i32_1 = arith.constant 0 : i32
    return %c0_i32, %arg0, %c0_i32_0 : i32, i32, i32
  }
  func.func @transform_1(%arg0: i32, %arg1: memref<17xi32, #tpu.memory_space<smem>>) -> (i32, i32) {
    %c0_i32 = arith.constant 0 : i32
    %c0_i32_0 = arith.constant 0 : i32
    return %arg0, %c0_i32 : i32, i32
  }
}

</mosaic_0001>

<bundles_post_ra>
// kernel: tpu_custom_call.1
= control target key start
LH: loop header
LB: loop body
LE: loop exit
PB: predicated region body
PF: predicated region fallthrough
CT: control target
= control target key end

     0   :  { %s897_s0 = inlined_call_operand.hbm [shape: s32[17], index: 0, kind: input, shape index: {}]   ;;  %s898_s1 = inlined_call_operand.hbm [shape: f32[3,8,512], index: 1, kind: input, shape index: {}]   ;;  %s899_s2 = inlined_call_operand.hbm [shape: s32[8,512], index: 2, kind: output, shape index: {}]  }
   0x1   :  { %s417_s11 = scalar_lea.hbm %s897_s0, 16 }
   0x2   :  { %p418_p0 = scmp.ne.s32.totalorder %s897_s0, %s417_s11  ;;  %p421_p1 = scmp.lt.u32.totalorder %s417_s11, %s897_s0 }
   0x4   :  { %p423_p2 = pnand %p421_p1, %p418_p0 }
   0x6   :  { %426 = shalt.err (!%p423_p2)  }
   0x7   :  { %s477_s16 = smov [#allocation3]  }
   0x8   :  { %8 = dma.hbm_to_smem %s897_s0, 16, %s477_s16, [#allocation2] }
   0x9   :  { %471 = dma.done.wait [#allocation2], 16 }
   0xa   :  { %472 = vsyncadd [#allocation2], 4294967280 }
   0xb   :  { %10 = sfence }
   0xc   :  { %11 = vsyncpa [#allocation5], 0 }
   0xd   :  { %12 = vsyncpa [#allocation6], 0  ;;  %s478_s19 = smov [#allocation4]   ;;  %s427_s23 = scalar_lea.hbm %s898_s1, 1536 }
   0xe   :  { %s18_s20 = sshll.u32 %s478_s19, 4  ;;  %p428_p3 = scmp.ne.s32.totalorder %s898_s1, %s427_s23  ;;  %s19_s20 = int_to_ptr.vmem [resolvable:$true] %s18_s20 }
   0xf   :  { %p431_p4 = scmp.lt.u32.totalorder %s427_s23, %s898_s1 }
  0x11   :  { %p433_p5 = pnand %p431_p4, %p428_p3 }
  0x13   :  { %436 = shalt.err (!%p433_p5)
}
  0x14   :  { %s437_s0 = scalar_lea.vmem %s19_s20, 1536  ;;  %p442_p7 = scmp.lt.s32.totalorder %s19_s20, %s19_s20 }
  0x15   :  { %p438_p6 = scmp.ne.s32.totalorder %s19_s20, %s437_s0  ;;  %p443_p8 = scmp.lt.s32.totalorder %s437_s0, %s437_s0 }
  0x17   :  { %p444_p9 = por %p443_p8, %p442_p7 }
  0x19   :  { %p445_p10 = pnand %p444_p9, %p438_p6 }
  0x1b   :  { %448 = shalt.err (!%p445_p10)
}
  0x1c   :  { %s479_s28 = smov 512   ;;  %s480_s29 = smov 32  }
  0x1d   :  { %24 = dma.hbm_to_vmem [thread:$0]  %s898_s1, 1536, %s19_s20, [#allocation5], %s479_s28, %s479_s28, %s480_s29  }
  0x1e   :  { %473 = dma.done.wait [#allocation5], 1536  }
  0x1f   :  { %474 = vsyncadd [#allocation5], 4294965760  ;;  %s167_s4 = sld [smem:[#allocation3]]  ;;  %s372_s5 = sld [smem:[#allocation3 + $0x1]]  ;;  %v28_v0 = vld [vmem:[#allocation4] sm:$0xff]  ;;  %v29_v12 = vld [vmem:[#allocation4 + $0x8] sm:$0xff] }
  0x20   :  { %s521_s6 = sld [smem:[#allocation3 + $0x2]]  ;;  %s523_s7 = sld [smem:[#allocation3 + $0x3]]  ;;  %v33_v1 = vld [vmem:[#allocation4 + $0x20] sm:$0xff]  ;;  %v360_v3 = vadd.f32 1.0, %v28_v0  ;;  %vm107_vm0 = vcmp.ge.f32.partialorder %v28_v0, 2.99999 }
  0x21   :  { %s525_s8 = sld [smem:[#allocation3 + $0x4]]  ;;  %s527_s9 = sld [smem:[#allocation3 + $0x5]]  ;;  %v537_v2 = vld [vmem:[#allocation4 + $0x40] sm:$0xff]  ;;  %v364_v4 = vadd.f32 2.0, %v33_v1  ;;  %vm111_vm1 = vcmp.lt.f32.partialorder %v28_v0, -0.99999 }
  0x22   :  { %s529_s10 = sld [smem:[#allocation3 + $0x6]]  ;;  %s531_s11 = sld [smem:[#allocation3 + $0x7]]  ;;  %v368_v5 = vadd.f32 -0.5, %v537_v2  ;;  %vm119_vm2 = vcmp.ge.f32.partialorder %v33_v1, 1.99999  ;;  %v47_v6 = vmul.f32 2.0, %v360_v3  ;;  %vm115_vm3 = vmor %vm107_vm0, %vm111_vm1 }
  0x23   :  { %s533_s12 = sld [smem:[#allocation3 + $0x8]]  ;;  %s535_s13 = sld [smem:[#allocation3 + $0x9]]  ;;  %v63_v7 = vmul.f32 2.0, %v364_v4  ;;  %vm546_vm4 = vmor %vm115_vm3, %vm119_vm2  ;;  %vm127_vm5 = vcmp.lt.f32.partialorder %v33_v1, -1.99999  ;;  %v562_v17 = vld [vmem:[#allocation4 + $0x28] sm:$0xff] }
  0x24   :  { %s539_s1 = sld [smem:[#allocation3 + $0xa]]  ;;  %s542_s14 = sld [smem:[#allocation3 + $0xb]]  ;;  %v79_v8 = vmul.f32 2.0, %v368_v5  ;;  %vm135_vm6 = vcmp.ge.f32.partialorder %v537_v2, 4.49999  ;;  %v51_v13 = vfloor.f32 %v47_v6  ;;  %v564_v18 = vld [vmem:[#allocation4 + $0x48] sm:$0xff]  ;;  %vm131_vm8 = vmor %vm546_vm4, %vm127_vm5 }
  0x25   :  { %s544_s15 = sld [smem:[#allocation3 + $0xc]]  ;;  %v551_v10 = vstv %s167_s4  ;;  %v553_v11 = vstv %s372_s5  ;;  %v67_v14 = vfloor.f32 %v63_v7  ;;  %s558_s16 = sld [smem:[#allocation3 + $0xd]]  ;;  %vm143_vm7 = vcmp.lt.f32.partialorder %v537_v2, 0.50001  ;;  %vm599_vm9 = vmor %vm131_vm8, %vm135_vm6  ;;  %v609_v45 = vld [vmem:[#allocation4 + $0x10] sm:$0xff] }
  0x26   :  { %v83_v15 = vfloor.f32 %v79_v8  ;;  %v556_v16 = vstv %s521_s6  ;;  %s560_s17 = sld [smem:[#allocation3 + $0xe]]  ;;  %v568_v19 = vstv %s523_s7  ;;  %v388_v22 = vtrunc.f32 %v51_v13  ;;  %s582_s18 = sld [smem:[#allocation3 + $0xf]]  ;;  %v611_v46 = vld [vmem:[#allocation4 + $0x30] sm:$0xff]  ;;  %vm619_vm12 = vmor %vm599_vm9, %vm143_vm7 }
  0x27   :  { %v571_v20 = vstv %s525_s8  ;;  %v574_v21 = vstv %s527_s9  ;;  %v396_v23 = vtrunc.f32 %v67_v14  ;;  %s587_s19 = sld [smem:[#allocation3 + $0x10]]  ;;  %v361_v27 = vadd.f32 1.0, %v29_v12  ;;  %v613_v47 = vld [vmem:[#allocation4 + $0x50] sm:$0xff]  ;;  %s481_s20 = smov [#allocation7]  }
  0x28   :  { %v404_v24 = vtrunc.f32 %v83_v15  ;;  %v580_v25 = vstv %s529_s10  ;;  %v585_v26 = vstv %s531_s11  ;;  %v365_v28 = vadd.f32 2.0, %v562_v17  ;;  %s351_s21 = sshll.u32 %s481_s20, 4  ;;  %s352_s21 = int_to_ptr.vmem [resolvable:$true] %s351_s21 }
  0x29   :  { %v369_v29 = vadd.f32 -0.5, %v564_v18  ;;  %v389_v30 = vcvt.f32.s32 %v388_v22  ;;  %v397_v31 = vcvt.f32.s32 %v396_v23  ;;  %v592_v32 = vstv %s533_s12  ;;  %s449_s22 = scalar_lea.vmem %s352_s21, 512  ;;  %p454_p12 = scmp.lt.s32.totalorder %s352_s21, %s352_s21 }
  0x2a   :  { %v595_v33 = vstv %s535_s13  ;;  %v604_v35 = vstv %s539_s1  ;;  %v607_v36 = vstv %s542_s14  ;;  %v48_v37 = vmul.f32 2.0, %v361_v27  ;;  %p450_p11 = scmp.ne.s32.totalorder %s352_s21, %s449_s22  ;;  %p455_p13 = scmp.lt.s32.totalorder %s449_s22, %s449_s22 }
  0x2b   :  { %v64_v38 = vmul.f32 2.0, %v365_v28  ;;  %v405_v39 = vcvt.f32.s32 %v404_v24  ;;  %v91_v40 = vmul.u32 64, %v389_v30  ;;  %v95_v41 = vmul.u32 8, %v397_v31 }
  0x2c   :  { %vm108_vm10 = vcmp.ge.f32.partialorder %v29_v12, 2.99999  ;;  %v52_v42 = vfloor.f32 %v48_v37  ;;  %v80_v44 = vmul.f32 2.0, %v369_v29  ;;  %vm112_vm11 = vcmp.lt.f32.partialorder %v29_v12, -0.99999  ;;  %p456_p0 = por %p455_p13, %p454_p12 }
  0x2d   :  { %v68_v43 = vfloor.f32 %v64_v38  ;;  %v99_v48 = vadd.s32 %v95_v41, %v91_v40  ;;  %v624_v50 = vstv %s544_s15  ;;  %v627_v51 = vstv %s558_s16  ;;  %vm116_vm13 = vmor %vm108_vm10, %vm112_vm11 }
  0x2e   :  { %v630_v52 = vstv %s560_s17  ;;  %v390_v53 = vtrunc.f32 %v52_v42  ;;  %v84_v55 = vfloor.f32 %v80_v44  ;;  %vm120_vm14 = vcmp.ge.f32.partialorder %v562_v17, 1.99999  ;;  %p457_p1 = pnand %p456_p0, %p450_p11 }
  0x2f   :  { %v398_v54 = vtrunc.f32 %v68_v43  ;;  %v103_v56 = vadd.s32 %v405_v39, %v99_v48  ;;  %v362_v57 = vadd.f32 1.0, %v609_v45  ;;  %v366_v58 = vadd.f32 2.0, %v611_v46  ;;  %vm647_vm15 = vmor %vm116_vm13, %vm120_vm14 }
  0x30   :  { %v370_v59 = vadd.f32 -0.5, %v613_v47  ;;  %v638_v60 = vstv %s582_s18  ;;  %v641_v61 = vstv %s587_s19  ;;  %v391_v62 = vcvt.f32.s32 %v390_v53 }
  0x31   :  { %v406_v63 = vtrunc.f32 %v84_v55  ;;  %v645_v0 = vsel %vm619_vm12, 512, %v103_v56  ;;  %v399_v1 = vcvt.f32.s32 %v398_v54  ;;  %vm128_vm0 = vcmp.lt.f32.partialorder %v562_v17, -1.99999  ;;  %v733_v56 = vld [vmem:[#allocation4 + $0x18] sm:$0xff] }
  0x32   :  { %v49_v3 = vmul.f32 2.0, %v362_v57  ;;  %v653_v4 = vshra.s32 %v645_v0, 5  ;;  %vm136_vm1 = vcmp.ge.f32.partialorder %v564_v18, 4.49999  ;;  %v65_v5 = vmul.f32 2.0, %v366_v58  ;;  %vm132_vm7 = vmor %vm647_vm15, %vm128_vm0 }
  0x33   :  { %v81_v6 = vmul.f32 2.0, %v370_v59  ;;  %v159_v7 = vand.u32 31, %v645_v0  ;;  %v407_v8 = vcvt.f32.s32 %v406_v63  ;;  %vm144_vm2 = vcmp.lt.f32.partialorder %v564_v18, 0.50001  ;;  %vm140_vm13 = vmor %vm132_vm7, %vm136_vm1 }
  0x34   :  { %vm109_vm3 = vcmp.ge.f32.partialorder %v609_v45, 2.99999  ;;  %vm163_vm4 = vcmp.eq.s32.totalorder %v653_v4, 0  ;;  %vm173_vm5 = vcmp.eq.s32.totalorder %v653_v4, 1  ;;  %vm183_vm6 = vcmp.eq.s32.totalorder %v653_v4, 2 }
  0x35   :  { %v92_v9 = vmul.u32 64, %v391_v62  ;;  %v169_v12 = vsel %vm163_vm4, %v551_v10, 0  ;;  %vm193_vm8 = vcmp.eq.s32.totalorder %v653_v4, 3  ;;  %v96_v13 = vmul.u32 8, %v399_v1  ;;  %v741_v62 = vld [vmem:[#allocation4 + $0x38] sm:$0xff] }
  0x36   :  { %v53_v14 = vfloor.f32 %v49_v3  ;;  %v179_v15 = vsel %vm173_vm5, %v553_v11, %v169_v12  ;;  %vm203_vm9 = vcmp.eq.s32.totalorder %v653_v4, 4  ;;  %v69_v17 = vfloor.f32 %v65_v5  ;;  %vm683_vm5 = vmor %vm140_vm13, %vm144_vm2 }
  0x37   :  { %v85_v22 = vfloor.f32 %v81_v6  ;;  %v189_v23 = vsel %vm183_vm6, %v556_v16, %v179_v15  ;;  %vm213_vm10 = vcmp.eq.s32.totalorder %v653_v4, 5  ;;  %vm223_vm11 = vcmp.eq.s32.totalorder %v653_v4, 6 }
  0x38   :  { %vm233_vm12 = vcmp.eq.s32.totalorder %v653_v4, 7  ;;  %v199_v24 = vsel %vm193_vm8, %v568_v19, %v189_v23  ;;  %vm243_vm14 = vcmp.eq.s32.totalorder %v653_v4, 8  ;;  %vm253_vm15 = vcmp.eq.s32.totalorder %v653_v4, 9 }
  0x39   :  { %vm263_vm0 = vcmp.eq.s32.totalorder %v653_v4, 10  ;;  %v209_v27 = vsel %vm203_vm9, %v571_v20, %v199_v24  ;;  %vm273_vm4 = vcmp.eq.s32.totalorder %v653_v4, 11  ;;  %v100_v28 = vadd.s32 %v96_v13, %v92_v9 }
  0x3a   :  { %v392_v29 = vtrunc.f32 %v53_v14  ;;  %v219_v30 = vsel %vm213_vm10, %v574_v21, %v209_v27  ;;  %v400_v34 = vtrunc.f32 %v69_v17  ;;  %v687_v37 = vtrunc.f32 %v85_v22 }
  0x3b   :  { %vm113_vm1 = vcmp.lt.f32.partialorder %v609_v45, -0.99999  ;;  %v229_v38 = vsel %vm223_vm11, %v580_v25, %v219_v30  ;;  %vm283_vm6 = vcmp.eq.s32.totalorder %v653_v4, 12  ;;  %v104_v39 = vadd.s32 %v407_v8, %v100_v28 }
  0x3c   :  { %v393_v40 = vcvt.f32.s32 %v392_v29  ;;  %v239_v18 = vsel %vm233_vm12, %v585_v26, %v229_v38  ;;  %vm293_vm2 = vcmp.eq.s32.totalorder %v653_v4, 13  ;;  %vm303_vm7 = vcmp.eq.s32.totalorder %v653_v4, 14  ;;  %vm117_vm8 = vmor %vm109_vm3, %vm113_vm1 }
  0x3d   :  { %vm121_vm9 = vcmp.ge.f32.partialorder %v611_v46, 1.99999  ;;  %v249_v41 = vsel %vm243_vm14, %v592_v32, %v239_v18  ;;  %vm313_vm10 = vcmp.eq.s32.totalorder %v653_v4, 15  ;;  %vm323_vm11 = vcmp.eq.s32.totalorder %v653_v4, 16  ;;  %v777_v4 = vld [vmem:[#allocation4 + $0x58] sm:$0xff] }
  0x3e   :  { %v709_v42 = vsel %vm683_vm5, 512, %v104_v39  ;;  %v259_v43 = vsel %vm253_vm15, %v595_v33, %v249_v41  ;;  %v401_v45 = vcvt.f32.s32 %v400_v34  ;;  %v409_v48 = vcvt.f32.s32 %v687_v37  ;;  %vm721_vm3 = vmor %vm117_vm8, %vm121_vm9 }
  0x3f   :  { %v715_v44 = vshra.s32 %v709_v42, 5  ;;  %v269_v49 = vsel %vm263_vm0, %v604_v35, %v259_v43  ;;  %v93_v53 = vmul.u32 64, %v393_v40  ;;  %vm129_vm12 = vcmp.lt.f32.partialorder %v611_v46, -1.99999 }
  0x40   :  { %vm137_vm13 = vcmp.ge.f32.partialorder %v613_v47, 4.49999  ;;  %v279_v55 = vsel %vm273_vm4, %v607_v36, %v269_v49  ;;  %v160_v58 = vand.u32 31, %v709_v42  ;;  %v97_v2 = vmul.u32 8, %v401_v45  ;;  %vm133_vm1 = vmor %vm721_vm3, %vm129_vm12 }
  0x41   :  { %vm164_vm14 = vcmp.eq.s32.totalorder %v715_v44, 0  ;;  %vm174_vm15 = vcmp.eq.s32.totalorder %v715_v44, 1  ;;  %vm184_vm5 = vcmp.eq.s32.totalorder %v715_v44, 2  ;;  %v289_v57 = vsel %vm283_vm6, %v624_v50, %v279_v55  ;;  %vm141_vm8 = vmor %vm133_vm1, %vm137_vm13 }
  0x42   :  { %v170_v59 = vsel %vm164_vm14, %v551_v10, 0  ;;  %vm194_vm0 = vcmp.eq.s32.totalorder %v715_v44, 3  ;;  %v299_v63 = vsel %vm293_vm2, %v627_v51, %v289_v57  ;;  %vm204_vm4 = vcmp.eq.s32.totalorder %v715_v44, 4 }
  0x43   :  { %v180_v1 = vsel %vm174_vm15, %v553_v11, %v170_v59  ;;  %v309_v3 = vsel %vm303_vm7, %v630_v52, %v299_v63  ;;  %vm214_vm6 = vcmp.eq.s32.totalorder %v715_v44, 5  ;;  %v363_v6 = vadd.f32 1.0, %v733_v56 }
  0x44   :  { %v190_v5 = vsel %vm184_vm5, %v556_v16, %v180_v1  ;;  %v319_v8 = vsel %vm313_vm10, %v638_v60, %v309_v3  ;;  %vm224_vm2 = vcmp.eq.s32.totalorder %v715_v44, 6  ;;  %v367_v46 = vadd.f32 2.0, %v741_v62 }
  0x45   :  { %v200_v9 = vsel %vm194_vm0, %v568_v19, %v190_v5  ;;  %v329_v12 = vsel %vm323_vm11, %v641_v61, %v319_v8  ;;  %vm234_vm7 = vcmp.eq.s32.totalorder %v715_v44, 7  ;;  %vm145_vm9 = vcmp.lt.f32.partialorder %v613_v47, 0.50001 }
  0x46   :  { %v210_v13 = vsel %vm204_vm4, %v571_v20, %v200_v9  ;;  %v333_v14 = vshra.s32 %v329_v12, %v159_v7  ;;  %vm244_vm10 = vcmp.eq.s32.totalorder %v715_v44, 8  ;;  %vm254_vm3 = vcmp.eq.s32.totalorder %v715_v44, 9  ;;  %vm149_vm13 = vmor %vm141_vm8, %vm145_vm9 }
  0x47   :  { %v220_v15 = vsel %vm214_vm6, %v574_v21, %v210_v13  ;;  %vm264_vm11 = vcmp.eq.s32.totalorder %v715_v44, 10  ;;  %vm274_vm12 = vcmp.eq.s32.totalorder %v715_v44, 11  ;;  %v101_v22 = vadd.s32 %v97_v2, %v93_v53 }
  0x48   :  { %v230_v17 = vsel %vm224_vm2, %v580_v25, %v220_v15  ;;  %v337_v23 = vand.u32 1, %v333_v14  ;;  %v50_v0 = vmul.f32 2.0, %v363_v6  ;;  %v66_v7 = vmul.f32 2.0, %v367_v46 }
  0x49   :  { %v240_v47 = vsel %vm234_vm7, %v585_v26, %v230_v17  ;;  %vm284_vm14 = vcmp.eq.s32.totalorder %v715_v44, 12  ;;  %v105_v27 = vadd.s32 %v409_v48, %v101_v22  ;;  %v371_v28 = vadd.f32 -0.5, %v777_v4 }
  0x4a   :  { %v250_v24 = vsel %vm244_vm10, %v592_v32, %v240_v47  ;;  %341 = vst [vmem:[#allocation7] sm:$0xff] %v337_v23  ;;  %vm294_vm15 = vcmp.eq.s32.totalorder %v715_v44, 13  ;;  %vm304_vm5 = vcmp.eq.s32.totalorder %v715_v44, 14  ;;  %vm110_vm0 = vcmp.ge.f32.partialorder %v733_v56, 2.99999 }
  0x4b   :  { %v260_v29 = vsel %vm254_vm3, %v595_v33, %v250_v24  ;;  %v795_v31 = vsel %vm149_vm13, 512, %v105_v27  ;;  %v54_v34 = vfloor.f32 %v50_v0  ;;  %vm114_vm4 = vcmp.lt.f32.partialorder %v733_v56, -0.99999 }
  0x4c   :  { %v270_v30 = vsel %vm264_vm11, %v604_v35, %v260_v29  ;;  %vm314_vm1 = vcmp.eq.s32.totalorder %v715_v44, 15  ;;  %v803_v38 = vshra.s32 %v795_v31, 5  ;;  %v70_v39 = vfloor.f32 %v66_v7  ;;  %vm118_vm10 = vmor %vm110_vm0, %vm114_vm4 }
  0x4d   :  { %v280_v37 = vsel %vm274_vm12, %v607_v36, %v270_v30  ;;  %vm324_vm6 = vcmp.eq.s32.totalorder %v715_v44, 16  ;;  %v82_v18 = vmul.f32 2.0, %v371_v28  ;;  %vm122_vm2 = vcmp.ge.f32.partialorder %v741_v62, 1.99999 }
  0x4e   :  { %v290_v40 = vsel %vm284_vm14, %v624_v50, %v280_v37  ;;  %vm165_vm7 = vcmp.eq.s32.totalorder %v803_v38, 0  ;;  %vm175_vm8 = vcmp.eq.s32.totalorder %v803_v38, 1  ;;  %vm185_vm9 = vcmp.eq.s32.totalorder %v803_v38, 2  ;;  %vm126_vm13 = vmor %vm118_vm10, %vm122_vm2 }
  0x4f   :  { %v300_v41 = vsel %vm294_vm15, %v627_v51, %v290_v40  ;;  %v171_v45 = vsel %vm165_vm7, %v551_v10, 0  ;;  %vm195_vm3 = vcmp.eq.s32.totalorder %v803_v38, 3  ;;  %v394_v48 = vtrunc.f32 %v54_v34 }
  0x50   :  { %v310_v43 = vsel %vm304_vm5, %v630_v52, %v300_v41  ;;  %v181_v53 = vsel %vm175_vm8, %v553_v11, %v171_v45  ;;  %vm205_vm11 = vcmp.eq.s32.totalorder %v803_v38, 4  ;;  %v402_v54 = vtrunc.f32 %v70_v39 }
  0x51   :  { %v320_v49 = vsel %vm314_vm1, %v638_v60, %v310_v43  ;;  %v191_v56 = vsel %vm185_vm9, %v556_v16, %v181_v53  ;;  %vm215_vm12 = vcmp.eq.s32.totalorder %v803_v38, 5  ;;  %vm130_vm14 = vcmp.lt.f32.partialorder %v741_v62, -1.99999 }
  0x52   :  { %v330_v55 = vsel %vm324_vm6, %v641_v61, %v320_v49  ;;  %v201_v59 = vsel %vm195_vm3, %v568_v19, %v191_v56  ;;  %vm225_vm15 = vcmp.eq.s32.totalorder %v803_v38, 6  ;;  %v86_v63 = vfloor.f32 %v82_v18  ;;  %vm134_vm1 = vmor %vm126_vm13, %vm130_vm14 }
  0x53   :  { %v334_v57 = vshra.s32 %v330_v55, %v160_v58  ;;  %v211_v44 = vsel %vm205_vm11, %v571_v20, %v201_v59  ;;  %vm235_vm5 = vcmp.eq.s32.totalorder %v803_v38, 7  ;;  %vm245_vm0 = vcmp.eq.s32.totalorder %v803_v38, 8 }
  0x54   :  { %v221_v2 = vsel %vm215_vm12, %v574_v21, %v211_v44  ;;  %vm255_vm4 = vcmp.eq.s32.totalorder %v803_v38, 9  ;;  %vm265_vm6 = vcmp.eq.s32.totalorder %v803_v38, 10  ;;  %v395_v58 = vcvt.f32.s32 %v394_v48 }
  0x55   :  { %v338_v1 = vand.u32 1, %v334_v57  ;;  %v231_v42 = vsel %vm225_vm15, %v580_v25, %v221_v2  ;;  %v403_v62 = vcvt.f32.s32 %v402_v54  ;;  %vm275_vm2 = vcmp.eq.s32.totalorder %v803_v38, 11 }
  0x56   :  { %v241_v3 = vsel %vm235_vm5, %v585_v26, %v231_v42  ;;  %v410_v5 = vtrunc.f32 %v86_v63  ;;  %vm138_vm7 = vcmp.ge.f32.partialorder %v777_v4, 4.49999  ;;  %v94_v8 = vmul.u32 64, %v395_v58 }
  0x57   :  { %342 = vst [vmem:[#allocation7 + $0x8] sm:$0xff] %v338_v1  ;;  %v251_v6 = vsel %vm245_vm0, %v592_v32, %v241_v3  ;;  %v98_v9 = vmul.u32 8, %v403_v62  ;;  %vm142_vm8 = vmor %vm134_vm1, %vm138_vm7  ;;  %vm146_vm9 = vcmp.lt.f32.partialorder %v777_v4, 0.50001  ;;  %vm285_vm10 = vcmp.eq.s32.totalorder %v803_v38, 12 }
  0x58   :  { %v261_v46 = vsel %vm255_vm4, %v595_v33, %v251_v6  ;;  %v411_v12 = vcvt.f32.s32 %v410_v5  ;;  %vm295_vm3 = vcmp.eq.s32.totalorder %v803_v38, 13  ;;  %vm305_vm11 = vcmp.eq.s32.totalorder %v803_v38, 14  ;;  %vm150_vm12 = vmor %vm142_vm8, %vm146_vm9 }
  0x59   :  { %v271_v13 = vsel %vm265_vm6, %v604_v35, %v261_v46  ;;  %v102_v14 = vadd.s32 %v98_v9, %v94_v8  ;;  %vm315_vm13 = vcmp.eq.s32.totalorder %v803_v38, 15  ;;  %v161_v22 = vand.u32 31, %v795_v31 }
  0x5a   :  { %v281_v15 = vsel %vm275_vm2, %v607_v36, %v271_v13  ;;  %vm325_vm14 = vcmp.eq.s32.totalorder %v803_v38, 16 }
  0x5b   :  { %v291_v4 = vsel %vm285_vm10, %v624_v50, %v281_v15  ;;  %v106_v17 = vadd.s32 %v411_v12, %v102_v14 }
  0x5c   :  { %v301_v23 = vsel %vm295_vm3, %v627_v51, %v291_v4 }
  0x5d   :  { %v311_v47 = vsel %vm305_vm11, %v630_v52, %v301_v23  ;;  %v154_v0 = vsel %vm150_vm12, 512, %v106_v17 }
  0x5e   :  { %v321_v7 = vsel %vm315_vm13, %v638_v60, %v311_v47  ;;  %v158_v24 = vshra.s32 %v154_v0, 5 }
  0x5f   :  { %v331_v27 = vsel %vm325_vm14, %v641_v61, %v321_v7 }
  0x60   :  { %v335_v28 = vshra.s32 %v331_v27, %v161_v22  ;;  %vm166_vm15 = vcmp.eq.s32.totalorder %v158_v24, 0  ;;  %vm176_vm5 = vcmp.eq.s32.totalorder %v158_v24, 1  ;;  %vm186_vm0 = vcmp.eq.s32.totalorder %v158_v24, 2 }
  0x61   :  { %v172_v29 = vsel %vm166_vm15, %v551_v10, 0  ;;  %vm196_vm4 = vcmp.eq.s32.totalorder %v158_v24, 3  ;;  %vm206_vm1 = vcmp.eq.s32.totalorder %v158_v24, 4  ;;  %vm216_vm6 = vcmp.eq.s32.totalorder %v158_v24, 5 }
  0x62   :  { %v339_v30 = vand.u32 1, %v335_v28  ;;  %v182_v31 = vsel %vm176_vm5, %v553_v11, %v172_v29  ;;  %vm226_vm2 = vcmp.eq.s32.totalorder %v158_v24, 6  ;;  %vm236_vm7 = vcmp.eq.s32.totalorder %v158_v24, 7 }
  0x63   :  { %v192_v34 = vsel %vm186_vm0, %v556_v16, %v182_v31  ;;  %vm246_vm8 = vcmp.eq.s32.totalorder %v158_v24, 8  ;;  %vm256_vm9 = vcmp.eq.s32.totalorder %v158_v24, 9  ;;  %vm266_vm10 = vcmp.eq.s32.totalorder %v158_v24, 10 }
  0x64   :  { %343 = vst [vmem:[#allocation7 + $0x10] sm:$0xff] %v339_v30  ;;  %v202_v37 = vsel %vm196_vm4, %v568_v19, %v192_v34  ;;  %vm276_vm3 = vcmp.eq.s32.totalorder %v158_v24, 11  ;;  %vm286_vm11 = vcmp.eq.s32.totalorder %v158_v24, 12  ;;  %vm296_vm12 = vcmp.eq.s32.totalorder %v158_v24, 13 }
  0x65   :  { %v212_v38 = vsel %vm206_vm1, %v571_v20, %v202_v37  ;;  %vm306_vm13 = vcmp.eq.s32.totalorder %v158_v24, 14  ;;  %vm316_vm14 = vcmp.eq.s32.totalorder %v158_v24, 15  ;;  %vm326_vm15 = vcmp.eq.s32.totalorder %v158_v24, 16 }
  0x66   :  { %v222_v39 = vsel %vm216_vm6, %v574_v21, %v212_v38 }
  0x67   :  { %v232_v10 = vsel %vm226_vm2, %v580_v25, %v222_v39  ;;  %v162_v25 = vand.u32 31, %v154_v0 }
  0x68   :  { %v242_v40 = vsel %vm236_vm7, %v585_v26, %v232_v10 }
  0x69   :  { %v252_v11 = vsel %vm246_vm8, %v592_v32, %v242_v40 }
  0x6a   :  { %v262_v16 = vsel %vm256_vm9, %v595_v33, %v252_v11 }
  0x6b   :  { %v272_v19 = vsel %vm266_vm10, %v604_v35, %v262_v16 }
  0x6c   :  { %v282_v20 = vsel %vm276_vm3, %v607_v36, %v272_v19 }
  0x6d   :  { %v292_v21 = vsel %vm286_vm11, %v624_v50, %v282_v20 }
  0x6e   :  { %v302_v18 = vsel %vm296_vm12, %v627_v51, %v292_v21 }
  0x6f   :  { %v312_v26 = vsel %vm306_vm13, %v630_v52, %v302_v18 }
  0x70   :  { %v322_v32 = vsel %vm316_vm14, %v638_v60, %v312_v26 }
  0x71   :  { %v332_v33 = vsel %vm326_vm15, %v641_v61, %v322_v32 }
  0x72   :  { %v336_v35 = vshra.s32 %v332_v33, %v162_v25 }
  0x74   :  { %v340_v41 = vand.u32 1, %v336_v35 }
  0x76   :  { %344 = vst [vmem:[#allocation7 + $0x18] sm:$0xff] %v340_v41 }
  0x77   :  { %460 = shalt.err (!%p457_p1)
}
  0x78   :  { %s461_s25 = scalar_lea.hbm %s899_s2, 512 }
  0x79   :  { %p462_p2 = scmp.ne.s32.totalorder %s899_s2, %s461_s25  ;;  %p465_p3 = scmp.lt.u32.totalorder %s461_s25, %s899_s2 }
  0x7b   :  { %p467_p4 = pnand %p465_p3, %p462_p2 }
  0x7d   :  { %470 = shalt.err (!%p467_p4)
}
  0x7e   :  { %354 = dma.vmem_to_hbm [thread:$0]  %s352_s21, 512, %s899_s2, [#allocation6]  }
  0x7f   :  { %475 = dma.done.wait [#allocation6], 512  }
  0x80   :  { %476 = vsyncadd [#allocation6], 4294966784 }
  0x81   :  { %358 = vsyncpa [#allocation5], 1 }
  0x82   :  { %359 = vsyncpa [#allocation6], 1 }

</bundles_post_ra>
